<compile_context>
chip_gen: v6e
topology: v6e:2x2x1
jax: 0.10.0
libtpu: 0.0.40
codegen_flags: <defaults>
</compile_context>

<pallas_src>
import functools
import math

import numpy as np
import jax
import jax.numpy as jnp
from jax.experimental import pallas as pl
from jax.experimental.pallas import tpu as pltpu


_SQRT2 = math.sqrt(2.0)

# ---------------- blur (upfirdn) filter constants ----------------
_BLUR_1D = np.array([1.0, 3.0, 3.0, 1.0], np.float64)
_BLUR_2D = np.outer(_BLUR_1D, _BLUR_1D)
_BLUR_2D = _BLUR_2D / _BLUR_2D.sum()                       # make_kernel([1,3,3,1])
_BLUR_UP = tuple(tuple(float(v) for v in row) for row in (_BLUR_2D * 4.0))  # * factor**2

_PARALLEL = pltpu.CompilerParams(dimension_semantics=("parallel",))


# ============================ in-kernel helpers ============================

def _zero_pad_hw(x, H, W, C):
    # zero-pad an (H, W, C) value by 1 on each spatial side, fully inside VMEM.
    zc = jnp.zeros((H, 1, C), jnp.float32)
    x = jnp.concatenate([zc, x, zc], axis=1)               # (H, W+2, C)
    zr = jnp.zeros((1, W + 2, C), jnp.float32)
    return jnp.concatenate([zr, x, zr], axis=0)            # (H+2, W+2, C)


def _im2col_in_kernel(xp, H, W, cin):
    # 9 shifted tap slabs -> one (HW, 9*cin) matrix (tap-major along lanes).
    cols = [xp[i:i + H, j:j + W, :] for i in range(3) for j in range(3)]
    return jnp.concatenate(cols, axis=-1).reshape(H * W, 9 * cin)


# ============================ Pallas kernels ============================

def _modulation_kernel(x_ref, w_ref, b_ref, o_ref, *, scale, n_layers):
    # All L EqualLinear modulations in a single launch (out = x @ (W*scale).T + b).
    for l in range(n_layers):
        o_ref[l] = (jnp.dot(x_ref[l], w_ref[l] * scale,
                            preferred_element_type=jnp.float32) + b_ref[l])


def _conv3x3_kernel(x_ref, w_ref, s_ref, n_ref, b_ref, o_ref, *, scale, H, W):
    # ModulatedConv2d 3x3 (demod) + NoiseInjection + FusedLeakyReLU, per batch sample.
    # x_ref: (1, H, W, Cin)  w_ref: (9, Cin, Cout)  s_ref: (1, 1, Cin)
    # n_ref: (1, HW, 1) scaled noise  b_ref: (1, Cout)  o_ref: (1, HW, Cout)
    cin = x_ref.shape[-1]
    cout = w_ref.shape[-1]
    xp = _zero_pad_hw(x_ref[0], H, W, cin)
    xcol = _im2col_in_kernel(xp, H, W, cin)                     # (HW, 9*Cin)
    style = scale * s_ref[0]                                    # (1, Cin)
    w = w_ref[...] * style[:, :, None]                          # modulate (9,Cin,Cout)
    d = jax.lax.rsqrt(jnp.sum(w * w, axis=(0, 1), keepdims=True) + 1e-8)
    w = (w * d).reshape(9 * cin, cout)                          # demodulate, flatten
    acc = jnp.dot(xcol.astype(jnp.bfloat16), w.astype(jnp.bfloat16),
                  preferred_element_type=jnp.float32)           # single MXU contraction
    acc = acc + n_ref[0] + b_ref[...]                           # noise + act bias
    o_ref[0] = jnp.where(acc >= 0.0, acc, 0.2 * acc) * _SQRT2   # FusedLeakyReLU


def _convup_kernel(x_ref, w_ref, q_ref, s_ref, n_ref, b_ref, o_ref, *, scale, H, W):
    # Fused modulated conv_transpose(stride=2) + Blur + noise + FusedLeakyReLU.
    # The transposed conv and the 4x4 blur are folded into four 3x3 convs over the
    # *un-dilated* input, one per output parity (no structural-zero MACs / DMA).
    # x_ref: (1,H,W,Cin)  w_ref: (4,9,Cin,Cout) parity weights  q_ref: (Cin,Cout)=sum_kk w^2
    # s_ref: (1,1,Cin)  n_ref: (1,4,HW,1)  b_ref: (1,Cout)  o_ref: (1,4,HW,Cout)
    cin = x_ref.shape[-1]
    cout = w_ref.shape[-1]
    xp = _zero_pad_hw(x_ref[0], H, W, cin)
    xcol = _im2col_in_kernel(xp, H, W, cin).astype(jnp.bfloat16)    # shared by all parities
    style = scale * s_ref[0]                                        # (1, Cin)
    # demod factor from the *original* 3x3 weight: rsqrt(sum (scale*w*style)^2 + eps)
    d = jax.lax.rsqrt(jnp.dot(style * style, q_ref[...],
                              preferred_element_type=jnp.float32) + 1e-8)   # (1, Cout)
    w = w_ref[...] * style[:, None, :, None] * d[:, None, None, :]  # (4,9,Cin,Cout)
    bias = b_ref[...]
    for p in range(4):
        wp = w[p].reshape(9 * cin, cout).astype(jnp.bfloat16)
        acc = jnp.dot(xcol, wp, preferred_element_type=jnp.float32)     # (HW, Cout)
        acc = acc + n_ref[0, p] + bias
        o_ref[0, p] = jnp.where(acc >= 0.0, acc, 0.2 * acc) * _SQRT2


def _torgb_kernel(x_ref, w_ref, s_ref, o_ref, *, scale):
    # ToRGB ModulatedConv2d 1x1, demodulate=False (bias skipped, as conv_warper does).
    # Modulation is applied to the activations (equivalent for 1x1, no demod).
    xm = x_ref[0] * (scale * s_ref[0])                              # (HW, Cin)
    o_ref[0] = jnp.dot(xm.astype(jnp.bfloat16), w_ref[...].astype(jnp.bfloat16),
                       preferred_element_type=jnp.float32)          # (HW, 3)


def _upsample_kernel(x_ref, o_ref, *, H, W, taps):
    # Upsample module: upfirdn2d(up=2, pad=(2,1), kernel*4), parity-decomposed so that
    # no zero-dilated tensor is ever built (4 taps per output parity, pure VPU).
    C = x_ref.shape[-1]
    xp = _zero_pad_hw(x_ref[0], H, W, C)
    for p in range(4):
        pu, pv = p // 2, p % 2
        acc = jnp.zeros((H, W, C), jnp.float32)
        for di in range(2):
            for dj in range(2):
                acc = acc + taps[2 * di + pu][2 * dj + pv] * \
                    xp[pu + di:pu + di + H, pv + dj:pv + dj + W, :]
        o_ref[0, p] = acc


def _pool_kernel(x_ref, mh_ref, mwt_ref, o_ref, *, out_size):
    # AdaptiveAvgPool2d((256,256)) as two batched contractions (all channels at once).
    C, H, W = x_ref.shape[1], x_ref.shape[2], x_ref.shape[3]
    xcat = jnp.concatenate([x_ref[0, c] for c in range(C)], axis=1)           # (H, C*W)
    t = jnp.dot(mh_ref[...], xcat, preferred_element_type=jnp.float32)        # (out, C*W)
    tcat = jnp.concatenate([t[:, c * W:(c + 1) * W] for c in range(C)], axis=0)
    out = jnp.dot(tcat, mwt_ref[...], preferred_element_type=jnp.float32)     # (C*out, out)
    for c in range(C):
        o_ref[0, c] = out[c * out_size:(c + 1) * out_size, :]


# ============================ Pallas wrappers ============================

def pallas_modulation(latents_sel, mod_wT, mod_b, scale):
    # latents_sel: (L, B, S)  mod_wT: (L, S, C)  mod_b: (L, 1, C)  -> (L, B, C)
    L, B_, _ = latents_sel.shape
    C = mod_wT.shape[-1]
    kern = functools.partial(_modulation_kernel, scale=scale, n_layers=L)
    return pl.pallas_call(
        kern, out_shape=jax.ShapeDtypeStruct((L, B_, C), jnp.float32),
    )(latents_sel, mod_wT, mod_b)


def pallas_conv3x3(x, w9, style, noise_hw, act_bias, *, scale):
    B_, H, W, cin = x.shape
    cout = w9.shape[-1]
    kern = functools.partial(_conv3x3_kernel, scale=scale, H=H, W=W)
    out = pl.pallas_call(
        kern,
        out_shape=jax.ShapeDtypeStruct((B_, H * W, cout), jnp.float32),
        grid=(B_,),
        in_specs=[pl.BlockSpec((1, H, W, cin), lambda b: (b, 0, 0, 0)),
                  pl.BlockSpec((9, cin, cout), lambda b: (0, 0, 0)),
                  pl.BlockSpec((1, 1, cin), lambda b: (b, 0, 0)),
                  pl.BlockSpec((1, H * W, 1), lambda b: (0, 0, 0)),
                  pl.BlockSpec((1, cout), lambda b: (0, 0))],
        out_specs=pl.BlockSpec((1, H * W, cout), lambda b: (b, 0, 0)),
        compiler_params=_PARALLEL,
    )(x, w9, style.reshape(B_, 1, cin), noise_hw.reshape(1, H * W, 1),
      act_bias.reshape(1, cout))
    return out.reshape(B_, H, W, cout)


def pallas_convup(x, wpar, wsq, style, noise4, act_bias, *, scale):
    B_, H, W, cin = x.shape
    cout = wpar.shape[-1]
    kern = functools.partial(_convup_kernel, scale=scale, H=H, W=W)
    return pl.pallas_call(
        kern,
        out_shape=jax.ShapeDtypeStruct((B_, 4, H * W, cout), jnp.float32),
        grid=(B_,),
        in_specs=[pl.BlockSpec((1, H, W, cin), lambda b: (b, 0, 0, 0)),
                  pl.BlockSpec((4, 9, cin, cout), lambda b: (0, 0, 0, 0)),
                  pl.BlockSpec((cin, cout), lambda b: (0, 0)),
                  pl.BlockSpec((1, 1, cin), lambda b: (b, 0, 0)),
                  pl.BlockSpec((1, 4, H * W, 1), lambda b: (0, 0, 0, 0)),
                  pl.BlockSpec((1, cout), lambda b: (0, 0))],
        out_specs=pl.BlockSpec((1, 4, H * W, cout), lambda b: (b, 0, 0, 0)),
        compiler_params=_PARALLEL,
    )(x, wpar, wsq, style.reshape(B_, 1, cin), noise4, act_bias.reshape(1, cout))


def pallas_torgb(x_flat, w, style, *, scale):
    B_, HW, cin = x_flat.shape
    kern = functools.partial(_torgb_kernel, scale=scale)
    return pl.pallas_call(
        kern,
        out_shape=jax.ShapeDtypeStruct((B_, HW, 3), jnp.float32),
        grid=(B_,),
        in_specs=[pl.BlockSpec((1, HW, cin), lambda b: (b, 0, 0)),
                  pl.BlockSpec((cin, 3), lambda b: (0, 0)),
                  pl.BlockSpec((1, 1, cin), lambda b: (b, 0, 0))],
        out_specs=pl.BlockSpec((1, HW, 3), lambda b: (b, 0, 0)),
        compiler_params=_PARALLEL,
    )(x_flat, w, style.reshape(B_, 1, cin))


def pallas_upsample(x):
    B_, H, W, C = x.shape
    kern = functools.partial(_upsample_kernel, H=H, W=W, taps=_BLUR_UP)
    return pl.pallas_call(
        kern,
        out_shape=jax.ShapeDtypeStruct((B_, 4, H, W, C), jnp.float32),
        grid=(B_,),
        in_specs=[pl.BlockSpec((1, H, W, C), lambda b: (b, 0, 0, 0))],
        out_specs=pl.BlockSpec((1, 4, H, W, C), lambda b: (b, 0, 0, 0, 0)),
        compiler_params=_PARALLEL,
    )(x)


def _adaptive_matrix(in_size, out_size):
    M = np.zeros((out_size, in_size), np.float32)
    for i in range(out_size):
        a = (i * in_size) // out_size
        b = -((-(i + 1) * in_size) // out_size)      # ceil
        M[i, a:b] = 1.0 / (b - a)
    return M


def pallas_face_pool(img_nchw, out_size=256):
    B_, C, H, W = img_nchw.shape
    Mh = jnp.asarray(_adaptive_matrix(H, out_size))
    MwT = jnp.asarray(_adaptive_matrix(W, out_size).T)
    kern = functools.partial(_pool_kernel, out_size=out_size)
    return pl.pallas_call(
        kern,
        out_shape=jax.ShapeDtypeStruct((B_, C, out_size, out_size), jnp.float32),
        grid=(B_,),
        in_specs=[pl.BlockSpec((1, C, H, W), lambda b: (b, 0, 0, 0)),
                  pl.BlockSpec((out_size, H), lambda b: (0, 0)),
                  pl.BlockSpec((W, out_size), lambda b: (0, 0))],
        out_specs=pl.BlockSpec((1, C, out_size, out_size), lambda b: (b, 0, 0, 0)),
        compiler_params=_PARALLEL,
    )(img_nchw, Mh, MwT)


# ==================== StyleGAN2 layer emulation (conv_warper) ====================

def _interleave_parity(y, H, W):
    # y parity-major (B, 4=[pu*2+pv], ..., C) -> (B, 2H, 2W, C)
    B_, C = y.shape[0], y.shape[-1]
    y = y.reshape(B_, 2, 2, H, W, C)
    y = jnp.transpose(y, (0, 3, 1, 4, 2, 5))
    return y.reshape(B_, 2 * H, 2 * W, C)


def _parity_split_noise(noise, H, W):
    # (1, 2H, 2W, 1) -> (1, 4, H*W, 1), parity-major (pu*2 + pv)
    n = noise.reshape(1, H, 2, W, 2)
    n = jnp.transpose(n, (0, 2, 4, 1, 3))
    return n.reshape(1, 4, H * W, 1)


def styled_conv(p, x, style_vec, noise_buf):
    return pallas_conv3x3(x, p['weight9'], style_vec,
                          p['noise_weight'] * noise_buf, p['act_bias'],
                          scale=p['scale'])


def styled_conv_up(p, x, style_vec, noise_buf):
    B_, H, W, _ = x.shape
    noise4 = _parity_split_noise(p['noise_weight'] * noise_buf, H, W)
    y = pallas_convup(x, p['wpar'], p['wsq'], style_vec, noise4, p['act_bias'],
                      scale=p['scale'])
    return _interleave_parity(y, H, W)


def to_rgb(p, x, style_vec):
    B_, H, W, cin = x.shape
    y = pallas_torgb(x.reshape(B_, H * W, cin), p['weight'], style_vec, scale=p['scale'])
    return y.reshape(B_, H, W, 3)


def upsample_skip(skip):
    B_, H, W, _ = skip.shape
    return _interleave_parity(pallas_upsample(skip), H, W)


# ============================ pSp forward ============================

def psp_forward(params, w, s, resize=True):
    B_ = w.shape[0]
    # ---- WPtoS: stacked EqualLinear modulations (single Pallas launch) ----
    lat_sel = jnp.transpose(w[:, params['latent_idx'], :], (1, 0, 2))   # (L, B, S)
    w2s_stack = pallas_modulation(lat_sel, params['mod_wT'], params['mod_b'],
                                  params['mod_scale'])
    w2s = [w2s_stack[l] for l in range(w2s_stack.shape[0])]
    # ---- w2s[i] += s[:, i, :] ----
    for i in range(s.shape[1]):
        w2s[i] = w2s[i] + s[:, i, :]
    noise = params['noises']
    # ---- generateWithS ----
    out = jnp.broadcast_to(params['const'], (B_,) + params['const'].shape[1:])
    out = styled_conv(params['conv1'], out, w2s[0], noise[0])
    skip = to_rgb(params['to_rgb1'], out, w2s[1])
    i, ni = 2, 1
    for blk in params['blocks']:
        out = styled_conv_up(blk['conv_up'], out, w2s[i], noise[ni])
        out = styled_conv(blk['conv'], out, w2s[i + 1], noise[ni + 1])
        temp = to_rgb(blk['to_rgb'], out, w2s[i + 2])
        skip = temp + upsample_skip(skip)
        i += 3
        ni += 2
    image = jnp.transpose(skip, (0, 3, 1, 2))     # back to PyTorch NCHW
    if resize:
        image = pallas_face_pool(image, 256)      # face_pool = AdaptiveAvgPool2d((256,256))
    return image


# ============================ parameter init ============================

def _conv_up_parity_weight(w):
    # Fold Blur(pad=(1,1), kernel*factor^2) into the stride-2 transposed conv:
    #   E[p, q] = sum_{a,b} K4[a,b] * w[p+a-1, q+b-1]   for p, q in [-2, 3]
    #   Wpar[pu, pv, di, dj] = E[pu + 2 - 2*di, pv + 2 - 2*dj]
    cin, cout = w.shape[2], w.shape[3]
    E = [[None] * 6 for _ in range(6)]
    for p in range(-2, 4):
        for q in range(-2, 4):
            acc = jnp.zeros((cin, cout), jnp.float32)
            for a in range(4):
                for b in range(4):
                    wi, wj = p + a - 1, q + b - 1
                    if 0 <= wi < 3 and 0 <= wj < 3:
                        acc = acc + _BLUR_UP[a][b] * w[wi, wj]
            E[p + 2][q + 2] = acc
    planes = []
    for pu in range(2):
        for pv in range(2):
            taps = [E[pu + 4 - 2 * di][pv + 4 - 2 * dj]
                    for di in range(3) for dj in range(3)]
            planes.append(jnp.stack(taps, axis=0))          # (9, cin, cout)
    return jnp.stack(planes, axis=0)                        # (4, 9, cin, cout)


def init_params(key, size, channel, style_dim):
    log_size = int(math.log2(size))
    n_blocks = log_size - 2
    keys = jax.random.split(key, 256)
    it = iter(range(256))

    def nk():
        return keys[next(it)]

    def conv_common(cin, cout, k):
        return {
            'scale': 1.0 / math.sqrt(cin * k * k),
            'noise_weight': jnp.float32(0.1),
            'act_bias': 0.05 * jax.random.normal(nk(), (cout,), jnp.float32),
            'mod_w': jax.random.normal(nk(), (cin, style_dim), jnp.float32),
            'mod_b': jnp.ones((cin,), jnp.float32),
        }

    def conv3x3_params(cin, cout):
        w = jax.random.normal(nk(), (3, 3, cin, cout), jnp.float32)
        p = {'weight9': w.reshape(9, cin, cout)}
        p.update(conv_common(cin, cout, 3))
        return p

    def convup_params(cin, cout):
        w = jax.random.normal(nk(), (3, 3, cin, cout), jnp.float32)
        p = {'wpar': _conv_up_parity_weight(w),
             'wsq': jnp.sum(w * w, axis=(0, 1))}
        p.update(conv_common(cin, cout, 3))
        return p

    def to_rgb_params(cin):
        w = jax.random.normal(nk(), (1, 1, cin, 3), jnp.float32)
        return {'weight': w.reshape(cin, 3),
                'scale': 1.0 / math.sqrt(cin),
                'mod_w': jax.random.normal(nk(), (cin, style_dim), jnp.float32),
                'mod_b': jnp.ones((cin,), jnp.float32)}

    params = {'const': jax.random.normal(nk(), (1, 4, 4, channel), jnp.float32)}
    conv1 = conv3x3_params(channel, channel)
    trgb1 = to_rgb_params(channel)
    blocks = []
    for _ in range(n_blocks):
        blocks.append({'conv_up': convup_params(channel, channel),
                       'conv': conv3x3_params(channel, channel),
                       'to_rgb': to_rgb_params(channel)})
    params['conv1'], params['to_rgb1'], params['blocks'] = conv1, trgb1, blocks

    mod_layers = [conv1, trgb1]
    for blk in blocks:
        mod_layers += [blk['conv_up'], blk['conv'], blk['to_rgb']]
    params['mod_wT'] = jnp.stack([m['mod_w'].T for m in mod_layers])        # (L, S, C)
    params['mod_b'] = jnp.stack([m['mod_b'][None, :] for m in mod_layers])  # (L, 1, C)
    params['mod_scale'] = 1.0 / math.sqrt(style_dim)

    idx = [0, 1]
    i = 1
    for _ in range(n_blocks):
        idx += [i, i + 1, i + 2]
        i += 2
    params['latent_idx'] = np.array(idx, np.int32)

    noises = [jax.random.normal(nk(), (1, 4, 4, 1), jnp.float32)]
    for b in range(n_blocks):
        res = 4 * 2 ** (b + 1)
        noises += [jax.random.normal(nk(), (1, res, res, 1), jnp.float32),
                   jax.random.normal(nk(), (1, res, res, 1), jnp.float32)]
    params['noises'] = noises
    return params


# ============================ main ============================

if __name__ == "__main__":
    SIZE, CHANNEL, STYLE_DIM, BATCH = 16, 128, 128, 2     # small synthetic StyleGAN2
    log_size = int(math.log2(SIZE))
    n_latent = 2 * log_size - 2                           # 6
    n_styles = 2 + 3 * (log_size - 2)                     # 8 style-space entries

    key = jax.random.PRNGKey(0)
    kp, kw, ks = jax.random.split(key, 3)
    params = init_params(kp, SIZE, CHANNEL, STYLE_DIM)
    w = jax.random.normal(kw, (BATCH, n_latent, STYLE_DIM), jnp.float32)      # W+ latents
    s = 0.1 * jax.random.normal(ks, (BATCH, n_styles, CHANNEL), jnp.float32)  # S offsets

    images = psp_forward(params, w, s, resize=True)
    images = jax.block_until_ready(images)
    assert images.shape == (BATCH, 3, 256, 256), images.shape
    assert bool(jnp.all(jnp.isfinite(images)))
    print("KERNEL_OK")
</pallas_src>

<mosaic_0001>
module attributes {stable_mosaic.version = 11 : i64} {
  func.func @_modulation_kernel(%arg0: memref<8x2x128xf32, #tpu.memory_space<vmem>>, %arg1: memref<8x128x128xf32, #tpu.memory_space<vmem>>, %arg2: memref<8x1x128xf32, #tpu.memory_space<vmem>>, %arg3: memref<8x2x128xf32, #tpu.memory_space<vmem>>) attributes {dimension_semantics = [], scalar_prefetch = 0 : i64, scratch_operands = 0 : i64, tpu.core_type = #tpu.core_type<tc>} {
    %c0 = arith.constant 0 : index
    %c0_0 = arith.constant 0 : index
    %c0_1 = arith.constant 0 : index
    %0 = vector.load %arg0[%c0, %c0_0, %c0_1] : memref<8x2x128xf32, #tpu.memory_space<vmem>>, vector<1x2x128xf32>
    %1 = vector.shape_cast %0 : vector<1x2x128xf32> to vector<2x128xf32>
    %c0_2 = arith.constant 0 : index
    %c0_3 = arith.constant 0 : index
    %c0_4 = arith.constant 0 : index
    %2 = vector.load %arg1[%c0_2, %c0_3, %c0_4] : memref<8x128x128xf32, #tpu.memory_space<vmem>>, vector<1x128x128xf32>
    %3 = vector.shape_cast %2 : vector<1x128x128xf32> to vector<128x128xf32>
    %cst = arith.constant 0.0883883461 : f32
    %4 = vector.broadcast %cst : f32 to vector<128x128xf32>
    %5 = arith.mulf %3, %4 : vector<128x128xf32>
    %cst_5 = arith.constant dense<0.000000e+00> : vector<2x128xf32>
    %6 = tpu.matmul %1, %5, %cst_5 {dimension_numbers = #tpu.dot_dimension_numbers<[1], [0], [0], [1], [0, 0, 1, 1], [], []>} : vector<2x128xf32>, vector<128x128xf32>, vector<2x128xf32> -> vector<2x128xf32>
    %c0_6 = arith.constant 0 : index
    %c0_7 = arith.constant 0 : index
    %c0_8 = arith.constant 0 : index
    %7 = vector.load %arg2[%c0_6, %c0_7, %c0_8] : memref<8x1x128xf32, #tpu.memory_space<vmem>>, vector<1x1x128xf32>
    %8 = vector.shape_cast %7 : vector<1x1x128xf32> to vector<1x128xf32>
    %9 = vector.broadcast %8 : vector<1x128xf32> to vector<2x128xf32>
    %10 = arith.addf %6, %9 : vector<2x128xf32>
    %c0_9 = arith.constant 0 : index
    %c0_10 = arith.constant 0 : index
    %c0_11 = arith.constant 0 : index
    %11 = vector.load %arg3[%c0_9, %c0_10, %c0_11] : memref<8x2x128xf32, #tpu.memory_space<vmem>>, vector<1x2x128xf32>
    %12 = vector.shape_cast %11 : vector<1x2x128xf32> to vector<2x128xf32>
    %13 = vector.shape_cast %10 : vector<2x128xf32> to vector<1x2x128xf32>
    tpu.vector_store %arg3[%c0_9, %c0_10, %c0_11], %13 {strides = array<i32>} : memref<8x2x128xf32, #tpu.memory_space<vmem>>, vector<1x2x128xf32>,
    %c1 = arith.constant 1 : index
    %c0_12 = arith.constant 0 : index
    %c0_13 = arith.constant 0 : index
    %14 = vector.load %arg0[%c1, %c0_12, %c0_13] : memref<8x2x128xf32, #tpu.memory_space<vmem>>, vector<1x2x128xf32>
    %15 = vector.shape_cast %14 : vector<1x2x128xf32> to vector<2x128xf32>
    %c1_14 = arith.constant 1 : index
    %c0_15 = arith.constant 0 : index
    %c0_16 = arith.constant 0 : index
    %16 = vector.load %arg1[%c1_14, %c0_15, %c0_16] : memref<8x128x128xf32, #tpu.memory_space<vmem>>, vector<1x128x128xf32>
    %17 = vector.shape_cast %16 : vector<1x128x128xf32> to vector<128x128xf32>
    %cst_17 = arith.constant 0.0883883461 : f32
    %18 = vector.broadcast %cst_17 : f32 to vector<128x128xf32>
    %19 = arith.mulf %17, %18 : vector<128x128xf32>
    %cst_18 = arith.constant dense<0.000000e+00> : vector<2x128xf32>
    %20 = tpu.matmul %15, %19, %cst_18 {dimension_numbers = #tpu.dot_dimension_numbers<[1], [0], [0], [1], [0, 0, 1, 1], [], []>} : vector<2x128xf32>, vector<128x128xf32>, vector<2x128xf32> -> vector<2x128xf32>
    %c1_19 = arith.constant 1 : index
    %c0_20 = arith.constant 0 : index
    %c0_21 = arith.constant 0 : index
    %21 = vector.load %arg2[%c1_19, %c0_20, %c0_21] : memref<8x1x128xf32, #tpu.memory_space<vmem>>, vector<1x1x128xf32>
    %22 = vector.shape_cast %21 : vector<1x1x128xf32> to vector<1x128xf32>
    %23 = vector.broadcast %22 : vector<1x128xf32> to vector<2x128xf32>
    %24 = arith.addf %20, %23 : vector<2x128xf32>
    %c1_22 = arith.constant 1 : index
    %c0_23 = arith.constant 0 : index
    %c0_24 = arith.constant 0 : index
    %25 = vector.load %arg3[%c1_22, %c0_23, %c0_24] : memref<8x2x128xf32, #tpu.memory_space<vmem>>, vector<1x2x128xf32>
    %26 = vector.shape_cast %25 : vector<1x2x128xf32> to vector<2x128xf32>
    %27 = vector.shape_cast %24 : vector<2x128xf32> to vector<1x2x128xf32>
    tpu.vector_store %arg3[%c1_22, %c0_23, %c0_24], %27 {strides = array<i32>} : memref<8x2x128xf32, #tpu.memory_space<vmem>>, vector<1x2x128xf32>,
    %c2 = arith.constant 2 : index
    %c0_25 = arith.constant 0 : index
    %c0_26 = arith.constant 0 : index
    %28 = vector.load %arg0[%c2, %c0_25, %c0_26] : memref<8x2x128xf32, #tpu.memory_space<vmem>>, vector<1x2x128xf32>
    %29 = vector.shape_cast %28 : vector<1x2x128xf32> to vector<2x128xf32>
    %c2_27 = arith.constant 2 : index
    %c0_28 = arith.constant 0 : index
    %c0_29 = arith.constant 0 : index
    %30 = vector.load %arg1[%c2_27, %c0_28, %c0_29] : memref<8x128x128xf32, #tpu.memory_space<vmem>>, vector<1x128x128xf32>
    %31 = vector.shape_cast %30 : vector<1x128x128xf32> to vector<128x128xf32>
    %cst_30 = arith.constant 0.0883883461 : f32
    %32 = vector.broadcast %cst_30 : f32 to vector<128x128xf32>
    %33 = arith.mulf %31, %32 : vector<128x128xf32>
    %cst_31 = arith.constant dense<0.000000e+00> : vector<2x128xf32>
    %34 = tpu.matmul %29, %33, %cst_31 {dimension_numbers = #tpu.dot_dimension_numbers<[1], [0], [0], [1], [0, 0, 1, 1], [], []>} : vector<2x128xf32>, vector<128x128xf32>, vector<2x128xf32> -> vector<2x128xf32>
    %c2_32 = arith.constant 2 : index
    %c0_33 = arith.constant 0 : index
    %c0_34 = arith.constant 0 : index
    %35 = vector.load %arg2[%c2_32, %c0_33, %c0_34] : memref<8x1x128xf32, #tpu.memory_space<vmem>>, vector<1x1x128xf32>
    %36 = vector.shape_cast %35 : vector<1x1x128xf32> to vector<1x128xf32>
    %37 = vector.broadcast %36 : vector<1x128xf32> to vector<2x128xf32>
    %38 = arith.addf %34, %37 : vector<2x128xf32>
    %c2_35 = arith.constant 2 : index
    %c0_36 = arith.constant 0 : index
    %c0_37 = arith.constant 0 : index
    %39 = vector.load %arg3[%c2_35, %c0_36, %c0_37] : memref<8x2x128xf32, #tpu.memory_space<vmem>>, vector<1x2x128xf32>
    %40 = vector.shape_cast %39 : vector<1x2x128xf32> to vector<2x128xf32>
    %41 = vector.shape_cast %38 : vector<2x128xf32> to vector<1x2x128xf32>
    tpu.vector_store %arg3[%c2_35, %c0_36, %c0_37], %41 {strides = array<i32>} : memref<8x2x128xf32, #tpu.memory_space<vmem>>, vector<1x2x128xf32>,
    %c3 = arith.constant 3 : index
    %c0_38 = arith.constant 0 : index
    %c0_39 = arith.constant 0 : index
    %42 = vector.load %arg0[%c3, %c0_38, %c0_39] : memref<8x2x128xf32, #tpu.memory_space<vmem>>, vector<1x2x128xf32>
    %43 = vector.shape_cast %42 : vector<1x2x128xf32> to vector<2x128xf32>
    %c3_40 = arith.constant 3 : index
    %c0_41 = arith.constant 0 : index
    %c0_42 = arith.constant 0 : index
    %44 = vector.load %arg1[%c3_40, %c0_41, %c0_42] : memref<8x128x128xf32, #tpu.memory_space<vmem>>, vector<1x128x128xf32>
    %45 = vector.shape_cast %44 : vector<1x128x128xf32> to vector<128x128xf32>
    %cst_43 = arith.constant 0.0883883461 : f32
    %46 = vector.broadcast %cst_43 : f32 to vector<128x128xf32>
    %47 = arith.mulf %45, %46 : vector<128x128xf32>
    %cst_44 = arith.constant dense<0.000000e+00> : vector<2x128xf32>
    %48 = tpu.matmul %43, %47, %cst_44 {dimension_numbers = #tpu.dot_dimension_numbers<[1], [0], [0], [1], [0, 0, 1, 1], [], []>} : vector<2x128xf32>, vector<128x128xf32>, vector<2x128xf32> -> vector<2x128xf32>
    %c3_45 = arith.constant 3 : index
    %c0_46 = arith.constant 0 : index
    %c0_47 = arith.constant 0 : index
    %49 = vector.load %arg2[%c3_45, %c0_46, %c0_47] : memref<8x1x128xf32, #tpu.memory_space<vmem>>, vector<1x1x128xf32>
    %50 = vector.shape_cast %49 : vector<1x1x128xf32> to vector<1x128xf32>
    %51 = vector.broadcast %50 : vector<1x128xf32> to vector<2x128xf32>
    %52 = arith.addf %48, %51 : vector<2x128xf32>
    %c3_48 = arith.constant 3 : index
    %c0_49 = arith.constant 0 : index
    %c0_50 = arith.constant 0 : index
    %53 = vector.load %arg3[%c3_48, %c0_49, %c0_50] : memref<8x2x128xf32, #tpu.memory_space<vmem>>, vector<1x2x128xf32>
    %54 = vector.shape_cast %53 : vector<1x2x128xf32> to vector<2x128xf32>
    %55 = vector.shape_cast %52 : vector<2x128xf32> to vector<1x2x128xf32>
    tpu.vector_store %arg3[%c3_48, %c0_49, %c0_50], %55 {strides = array<i32>} : memref<8x2x128xf32, #tpu.memory_space<vmem>>, vector<1x2x128xf32>,
    %c4 = arith.constant 4 : index
    %c0_51 = arith.constant 0 : index
    %c0_52 = arith.constant 0 : index
    %56 = vector.load %arg0[%c4, %c0_51, %c0_52] : memref<8x2x128xf32, #tpu.memory_space<vmem>>, vector<1x2x128xf32>
    %57 = vector.shape_cast %56 : vector<1x2x128xf32> to vector<2x128xf32>
    %c4_53 = arith.constant 4 : index
    %c0_54 = arith.constant 0 : index
    %c0_55 = arith.constant 0 : index
    %58 = vector.load %arg1[%c4_53, %c0_54, %c0_55] : memref<8x128x128xf32, #tpu.memory_space<vmem>>, vector<1x128x128xf32>
    %59 = vector.shape_cast %58 : vector<1x128x128xf32> to vector<128x128xf32>
    %cst_56 = arith.constant 0.0883883461 : f32
    %60 = vector.broadcast %cst_56 : f32 to vector<128x128xf32>
    %61 = arith.mulf %59, %60 : vector<128x128xf32>
    %cst_57 = arith.constant dense<0.000000e+00> : vector<2x128xf32>
    %62 = tpu.matmul %57, %61, %cst_57 {dimension_numbers = #tpu.dot_dimension_numbers<[1], [0], [0], [1], [0, 0, 1, 1], [], []>} : vector<2x128xf32>, vector<128x128xf32>, vector<2x128xf32> -> vector<2x128xf32>
    %c4_58 = arith.constant 4 : index
    %c0_59 = arith.constant 0 : index
    %c0_60 = arith.constant 0 : index
    %63 = vector.load %arg2[%c4_58, %c0_59, %c0_60] : memref<8x1x128xf32, #tpu.memory_space<vmem>>, vector<1x1x128xf32>
    %64 = vector.shape_cast %63 : vector<1x1x128xf32> to vector<1x128xf32>
    %65 = vector.broadcast %64 : vector<1x128xf32> to vector<2x128xf32>
    %66 = arith.addf %62, %65 : vector<2x128xf32>
    %c4_61 = arith.constant 4 : index
    %c0_62 = arith.constant 0 : index
    %c0_63 = arith.constant 0 : index
    %67 = vector.load %arg3[%c4_61, %c0_62, %c0_63] : memref<8x2x128xf32, #tpu.memory_space<vmem>>, vector<1x2x128xf32>
    %68 = vector.shape_cast %67 : vector<1x2x128xf32> to vector<2x128xf32>
    %69 = vector.shape_cast %66 : vector<2x128xf32> to vector<1x2x128xf32>
    tpu.vector_store %arg3[%c4_61, %c0_62, %c0_63], %69 {strides = array<i32>} : memref<8x2x128xf32, #tpu.memory_space<vmem>>, vector<1x2x128xf32>,
    %c5 = arith.constant 5 : index
    %c0_64 = arith.constant 0 : index
    %c0_65 = arith.constant 0 : index
    %70 = vector.load %arg0[%c5, %c0_64, %c0_65] : memref<8x2x128xf32, #tpu.memory_space<vmem>>, vector<1x2x128xf32>
    %71 = vector.shape_cast %70 : vector<1x2x128xf32> to vector<2x128xf32>
    %c5_66 = arith.constant 5 : index
    %c0_67 = arith.constant 0 : index
    %c0_68 = arith.constant 0 : index
    %72 = vector.load %arg1[%c5_66, %c0_67, %c0_68] : memref<8x128x128xf32, #tpu.memory_space<vmem>>, vector<1x128x128xf32>
    %73 = vector.shape_cast %72 : vector<1x128x128xf32> to vector<128x128xf32>
    %cst_69 = arith.constant 0.0883883461 : f32
    %74 = vector.broadcast %cst_69 : f32 to vector<128x128xf32>
    %75 = arith.mulf %73, %74 : vector<128x128xf32>
    %cst_70 = arith.constant dense<0.000000e+00> : vector<2x128xf32>
    %76 = tpu.matmul %71, %75, %cst_70 {dimension_numbers = #tpu.dot_dimension_numbers<[1], [0], [0], [1], [0, 0, 1, 1], [], []>} : vector<2x128xf32>, vector<128x128xf32>, vector<2x128xf32> -> vector<2x128xf32>
    %c5_71 = arith.constant 5 : index
    %c0_72 = arith.constant 0 : index
    %c0_73 = arith.constant 0 : index
    %77 = vector.load %arg2[%c5_71, %c0_72, %c0_73] : memref<8x1x128xf32, #tpu.memory_space<vmem>>, vector<1x1x128xf32>
    %78 = vector.shape_cast %77 : vector<1x1x128xf32> to vector<1x128xf32>
    %79 = vector.broadcast %78 : vector<1x128xf32> to vector<2x128xf32>
    %80 = arith.addf %76, %79 : vector<2x128xf32>
    %c5_74 = arith.constant 5 : index
    %c0_75 = arith.constant 0 : index
    %c0_76 = arith.constant 0 : index
    %81 = vector.load %arg3[%c5_74, %c0_75, %c0_76] : memref<8x2x128xf32, #tpu.memory_space<vmem>>, vector<1x2x128xf32>
    %82 = vector.shape_cast %81 : vector<1x2x128xf32> to vector<2x128xf32>
    %83 = vector.shape_cast %80 : vector<2x128xf32> to vector<1x2x128xf32>
    tpu.vector_store %arg3[%c5_74, %c0_75, %c0_76], %83 {strides = array<i32>} : memref<8x2x128xf32, #tpu.memory_space<vmem>>, vector<1x2x128xf32>,
    %c6 = arith.constant 6 : index
    %c0_77 = arith.constant 0 : index
    %c0_78 = arith.constant 0 : index
    %84 = vector.load %arg0[%c6, %c0_77, %c0_78] : memref<8x2x128xf32, #tpu.memory_space<vmem>>, vector<1x2x128xf32>
    %85 = vector.shape_cast %84 : vector<1x2x128xf32> to vector<2x128xf32>
    %c6_79 = arith.constant 6 : index
    %c0_80 = arith.constant 0 : index
    %c0_81 = arith.constant 0 : index
    %86 = vector.load %arg1[%c6_79, %c0_80, %c0_81] : memref<8x128x128xf32, #tpu.memory_space<vmem>>, vector<1x128x128xf32>
    %87 = vector.shape_cast %86 : vector<1x128x128xf32> to vector<128x128xf32>
    %cst_82 = arith.constant 0.0883883461 : f32
    %88 = vector.broadcast %cst_82 : f32 to vector<128x128xf32>
    %89 = arith.mulf %87, %88 : vector<128x128xf32>
    %cst_83 = arith.constant dense<0.000000e+00> : vector<2x128xf32>
    %90 = tpu.matmul %85, %89, %cst_83 {dimension_numbers = #tpu.dot_dimension_numbers<[1], [0], [0], [1], [0, 0, 1, 1], [], []>} : vector<2x128xf32>, vector<128x128xf32>, vector<2x128xf32> -> vector<2x128xf32>
    %c6_84 = arith.constant 6 : index
    %c0_85 = arith.constant 0 : index
    %c0_86 = arith.constant 0 : index
    %91 = vector.load %arg2[%c6_84, %c0_85, %c0_86] : memref<8x1x128xf32, #tpu.memory_space<vmem>>, vector<1x1x128xf32>
    %92 = vector.shape_cast %91 : vector<1x1x128xf32> to vector<1x128xf32>
    %93 = vector.broadcast %92 : vector<1x128xf32> to vector<2x128xf32>
    %94 = arith.addf %90, %93 : vector<2x128xf32>
    %c6_87 = arith.constant 6 : index
    %c0_88 = arith.constant 0 : index
    %c0_89 = arith.constant 0 : index
    %95 = vector.load %arg3[%c6_87, %c0_88, %c0_89] : memref<8x2x128xf32, #tpu.memory_space<vmem>>, vector<1x2x128xf32>
    %96 = vector.shape_cast %95 : vector<1x2x128xf32> to vector<2x128xf32>
    %97 = vector.shape_cast %94 : vector<2x128xf32> to vector<1x2x128xf32>
    tpu.vector_store %arg3[%c6_87, %c0_88, %c0_89], %97 {strides = array<i32>} : memref<8x2x128xf32, #tpu.memory_space<vmem>>, vector<1x2x128xf32>,
    %c7 = arith.constant 7 : index
    %c0_90 = arith.constant 0 : index
    %c0_91 = arith.constant 0 : index
    %98 = vector.load %arg0[%c7, %c0_90, %c0_91] : memref<8x2x128xf32, #tpu.memory_space<vmem>>, vector<1x2x128xf32>
    %99 = vector.shape_cast %98 : vector<1x2x128xf32> to vector<2x128xf32>
    %c7_92 = arith.constant 7 : index
    %c0_93 = arith.constant 0 : index
    %c0_94 = arith.constant 0 : index
    %100 = vector.load %arg1[%c7_92, %c0_93, %c0_94] : memref<8x128x128xf32, #tpu.memory_space<vmem>>, vector<1x128x128xf32>
    %101 = vector.shape_cast %100 : vector<1x128x128xf32> to vector<128x128xf32>
    %cst_95 = arith.constant 0.0883883461 : f32
    %102 = vector.broadcast %cst_95 : f32 to vector<128x128xf32>
    %103 = arith.mulf %101, %102 : vector<128x128xf32>
    %cst_96 = arith.constant dense<0.000000e+00> : vector<2x128xf32>
    %104 = tpu.matmul %99, %103, %cst_96 {dimension_numbers = #tpu.dot_dimension_numbers<[1], [0], [0], [1], [0, 0, 1, 1], [], []>} : vector<2x128xf32>, vector<128x128xf32>, vector<2x128xf32> -> vector<2x128xf32>
    %c7_97 = arith.constant 7 : index
    %c0_98 = arith.constant 0 : index
    %c0_99 = arith.constant 0 : index
    %105 = vector.load %arg2[%c7_97, %c0_98, %c0_99] : memref<8x1x128xf32, #tpu.memory_space<vmem>>, vector<1x1x128xf32>
    %106 = vector.shape_cast %105 : vector<1x1x128xf32> to vector<1x128xf32>
    %107 = vector.broadcast %106 : vector<1x128xf32> to vector<2x128xf32>
    %108 = arith.addf %104, %107 : vector<2x128xf32>
    %c7_100 = arith.constant 7 : index
    %c0_101 = arith.constant 0 : index
    %c0_102 = arith.constant 0 : index
    %109 = vector.load %arg3[%c7_100, %c0_101, %c0_102] : memref<8x2x128xf32, #tpu.memory_space<vmem>>, vector<1x2x128xf32>
    %110 = vector.shape_cast %109 : vector<1x2x128xf32> to vector<2x128xf32>
    %111 = vector.shape_cast %108 : vector<2x128xf32> to vector<1x2x128xf32>
    tpu.vector_store %arg3[%c7_100, %c0_101, %c0_102], %111 {strides = array<i32>} : memref<8x2x128xf32, #tpu.memory_space<vmem>>, vector<1x2x128xf32>,
    return
  }
}

</mosaic_0001>

<bundles_post_ra>
// kernel: tpu_custom_call.1
= control target key start
LH: loop header
LB: loop body
LE: loop exit
PB: predicated region body
PF: predicated region fallthrough
CT: control target
= control target key end

     0   :  { %8 = vsyncpa [#allocation3], 0  ;;  %s1706_s0 = inlined_call_operand.hbm [shape: f32[8,2,128], index: 0, kind: input, shape index: {}]   ;;  %s1707_s1 = inlined_call_operand.hbm [shape: f32[8,128,128], index: 1, kind: input, shape index: {}]   ;;  %s1708_s2 = inlined_call_operand.hbm [shape: f32[8,1,128], index: 2, kind: input, shape index: {}]   ;;  %s1709_s3 = inlined_call_operand.hbm [shape: f32[8,2,128], index: 3, kind: output, shape index: {}]  }
   0x1   :  { %9 = vsyncpa [#allocation6], 0 }
   0x2   :  { %10 = vsyncpa [#allocation4], 0  ;;  %s1512_s12 = smov [#allocation5]  }
   0x3   :  { %s28_s13 = sshll.u32 %s1512_s12, 4  ;;  %s29_s13 = int_to_ptr.vmem [resolvable:$true] %s28_s13 }
   0x4   :  { %s1434_s14 = scalar_lea.vmem %s29_s13, 16384  ;;  %p1439_p1 = scmp.lt.s32.totalorder %s29_s13, %s29_s13 }
   0x5   :  { %p1435_p0 = scmp.ne.s32.totalorder %s29_s13, %s1434_s14  ;;  %p1440_p2 = scmp.lt.s32.totalorder %s1434_s14, %s1434_s14 }
   0x7   :  { %p1441_p3 = por %p1440_p2, %p1439_p1 }
   0x9   :  { %p1442_p4 = pnand %p1441_p3, %p1435_p0 }
   0xb   :  { %1445 = shalt.err (!%p1442_p4)
}
   0xc   :  { %s1513_s15 = smov 128   ;;  %s1514_s16 = smov 8  }
   0xd   :  { %34 = dma.hbm_to_vmem [thread:$0]  %s1707_s1, 16384, %s29_s13, [#allocation6], %s1513_s15, %s1513_s15, %s1514_s16  }
   0xe   :  { %s1515_s19 = smov [#allocation2]  }
   0xf   :  { %s16_s20 = sshll.u32 %s1515_s19, 4  ;;  %s17_s20 = int_to_ptr.vmem [resolvable:$true] %s16_s20 }
  0x10   :  { %s1454_s21 = scalar_lea.vmem %s17_s20, 256  ;;  %p1459_p6 = scmp.lt.s32.totalorder %s17_s20, %s17_s20 }
  0x11   :  { %p1455_p5 = scmp.ne.s32.totalorder %s17_s20, %s1454_s21  ;;  %p1460_p7 = scmp.lt.s32.totalorder %s1454_s21, %s1454_s21 }
  0x13   :  { %p1461_p8 = por %p1460_p7, %p1459_p6 }
  0x15   :  { %p1462_p9 = pnand %p1461_p8, %p1455_p5 }
  0x17   :  { %1465 = shalt.err (!%p1462_p9)
}
  0x18   :  { %s1516_s22 = smov 32   ;;  %s1517_s23 = smov 2  }
  0x19   :  { %22 = dma.hbm_to_vmem [thread:$0]  %s1706_s0, 256, %s17_s20, [#allocation3], %s1516_s22, %s1516_s22, %s1517_s23  }
  0x1a   :  { %s1518_s1 = smov [#allocation7]  }
  0x1b   :  { %s40_s26 = sshll.u32 %s1518_s1, 4  ;;  %s41_s26 = int_to_ptr.vmem [resolvable:$true] %s40_s26 }
  0x1c   :  { %s1474_s27 = scalar_lea.vmem %s41_s26, 128  ;;  %p1479_p11 = scmp.lt.s32.totalorder %s41_s26, %s41_s26 }
  0x1d   :  { %p1475_p10 = scmp.ne.s32.totalorder %s41_s26, %s1474_s27  ;;  %p1480_p12 = scmp.lt.s32.totalorder %s1474_s27, %s1474_s27 }
  0x1f   :  { %p1481_p13 = por %p1480_p12, %p1479_p11 }
  0x21   :  { %p1482_p0 = pnand %p1481_p13, %p1475_p10 }
  0x23   :  { %1485 = shalt.err (!%p1482_p0)
}
  0x24   :  { %s1519_s28 = smov 16   ;;  %s1520_s29 = smov 1  }
  0x25   :  { %46 = dma.hbm_to_vmem [thread:$0]  %s1708_s2, 128, %s41_s26, [#allocation6], %s1519_s28, %s1519_s28, %s1520_s29  }
  0x26   :  { %1506 = dma.done.wait [#allocation3], 256  }
  0x27   :  { %1507 = vsyncadd [#allocation3], 4294967040 }
  0x28   :  { %1508 = dma.done.wait [#allocation6], 16512  }
  0x29   :  { %1509 = vsyncadd [#allocation6], 4294950784  ;;  %v1521_v0 = vmov 0.0   ;;  %vm1522_vm0 = vmmov 0   ;;  %v72_v1 = vld [vmem:[#allocation5 + $0x78] sm:$0xff]  ;;  %v71_v3 = vld [vmem:[#allocation5 + $0x70] sm:$0xff] }
  0x2a   :  { %1134 = vmatprep.subr.mxu0 %v1521_v0  ;;  %1169 = vmatprep.subr.mxu1 %v1521_v0  ;;  %v185_v2 = vld [vmem:[#allocation5 + $0xf8] sm:$0xff]  ;;  %v88_v4 = vmul.f32 0.088388346, %v72_v1  ;;  %v87_v6 = vmul.f32 0.088388346, %v71_v3  ;;  %v184_v7 = vld [vmem:[#allocation5 + $0xf0] sm:$0xff] }
  0x2b   :  { %1166 = vmatprep.mubr.msk.f32.mxu0 %vm1522_vm0, %v1521_v0  ;;  %1201 = vmatprep.mubr.msk.f32.mxu1 %vm1522_vm0, %v1521_v0  ;;  %v201_v5 = vmul.f32 0.088388346, %v185_v2  ;;  %v70_v8 = vld [vmem:[#allocation5 + $0x68] sm:$0xff]  ;;  %v200_v10 = vmul.f32 0.088388346, %v184_v7  ;;  %v69_v13 = vld [vmem:[#allocation5 + $0x60] sm:$0xff] }
  0x2c   :  { %v183_v9 = vld [vmem:[#allocation5 + $0xe8] sm:$0xff]  ;;  %1135 = vmatpush3.msra.mxu0 %v88_v4  ;;  %v86_v11 = vmul.f32 0.088388346, %v70_v8  ;;  %v182_v14 = vld [vmem:[#allocation5 + $0xe0] sm:$0xff]  ;;  %v68_v15 = vld [vmem:[#allocation5 + $0x58] sm:$0xff]  ;;  %s1523_s0 = smov [#allocation8]  }
  0x2d   :  { %1170 = vmatpush3.msra.mxu1 %v201_v5  ;;  %v199_v12 = vmul.f32 0.088388346, %v183_v9  ;;  %1136 = vmatprep.subr.mxu0 %v1521_v0  ;;  %v85_v16 = vmul.f32 0.088388346, %v69_v13  ;;  %v198_v17 = vmul.f32 0.088388346, %v182_v14 }
  0x2e   :  { %1171 = vmatprep.subr.mxu1 %v1521_v0  ;;  %1137 = vmatpush3.msra.mxu0 %v87_v6  ;;  %v181_v18 = vld [vmem:[#allocation5 + $0xd8] sm:$0xff]  ;;  %v67_v19 = vld [vmem:[#allocation5 + $0x50] sm:$0xff]  ;;  %v84_v21 = vmul.f32 0.088388346, %v68_v15  ;;  %v66_v23 = vld [vmem:[#allocation5 + $0x48] sm:$0xff]  ;;  %s977_s2 = sshll.u32 %s1523_s0, 4  ;;  %s978_s2 = int_to_ptr.vmem [resolvable:$true] %s977_s2 }
  0x2f   :  { %1172 = vmatpush3.msra.mxu1 %v200_v10  ;;  %1138 = vmatprep.subr.mxu0 %v1521_v0  ;;  %v180_v20 = vld [vmem:[#allocation5 + $0xd0] sm:$0xff]  ;;  %v197_v22 = vmul.f32 0.088388346, %v181_v18  ;;  %v179_v24 = vld [vmem:[#allocation5 + $0xc8] sm:$0xff]  ;;  %v83_v25 = vmul.f32 0.088388346, %v67_v19  ;;  %p1491_p2 = scmp.lt.s32.totalorder %s978_s2, %s978_s2 }
  0x30   :  { %1173 = vmatprep.subr.mxu1 %v1521_v0  ;;  %1139 = vmatpush3.msra.mxu0 %v86_v11  ;;  %v196_v26 = vmul.f32 0.088388346, %v180_v20  ;;  %v65_v27 = vld [vmem:[#allocation5 + $0x40] sm:$0xff]  ;;  %v82_v29 = vmul.f32 0.088388346, %v66_v23  ;;  %v64_v31 = vld [vmem:[#allocation5 + $0x38] sm:$0xff] }
  0x31   :  { %1174 = vmatpush3.msra.mxu1 %v199_v12  ;;  %1140 = vmatprep.subr.mxu0 %v1521_v0  ;;  %v178_v28 = vld [vmem:[#allocation5 + $0xc0] sm:$0xff]  ;;  %v195_v30 = vmul.f32 0.088388346, %v179_v24  ;;  %v177_v32 = vld [vmem:[#allocation5 + $0xb8] sm:$0xff]  ;;  %v81_v33 = vmul.f32 0.088388346, %v65_v27 }
  0x32   :  { %1175 = vmatprep.subr.mxu1 %v1521_v0  ;;  %1141 = vmatpush3.msra.mxu0 %v85_v16  ;;  %v194_v34 = vmul.f32 0.088388346, %v178_v28  ;;  %v63_v35 = vld [vmem:[#allocation5 + $0x30] sm:$0xff]  ;;  %v80_v37 = vmul.f32 0.088388346, %v64_v31  ;;  %v62_v39 = vld [vmem:[#allocation5 + $0x28] sm:$0xff] }
  0x33   :  { %1176 = vmatpush3.msra.mxu1 %v198_v17  ;;  %1142 = vmatprep.subr.mxu0 %v1521_v0  ;;  %v176_v36 = vld [vmem:[#allocation5 + $0xb0] sm:$0xff]  ;;  %v193_v38 = vmul.f32 0.088388346, %v177_v32  ;;  %v175_v40 = vld [vmem:[#allocation5 + $0xa8] sm:$0xff]  ;;  %v79_v41 = vmul.f32 0.088388346, %v63_v35 }
  0x34   :  { %1177 = vmatprep.subr.mxu1 %v1521_v0  ;;  %1143 = vmatpush3.msra.mxu0 %v84_v21  ;;  %v192_v42 = vmul.f32 0.088388346, %v176_v36  ;;  %v61_v43 = vld [vmem:[#allocation5 + $0x20] sm:$0xff]  ;;  %v78_v45 = vmul.f32 0.088388346, %v62_v39  ;;  %v60_v47 = vld [vmem:[#allocation5 + $0x18] sm:$0xff] }
  0x35   :  { %1178 = vmatpush3.msra.mxu1 %v197_v22  ;;  %1144 = vmatprep.subr.mxu0 %v1521_v0  ;;  %v174_v44 = vld [vmem:[#allocation5 + $0xa0] sm:$0xff]  ;;  %v191_v46 = vmul.f32 0.088388346, %v175_v40  ;;  %v173_v48 = vld [vmem:[#allocation5 + $0x98] sm:$0xff]  ;;  %v77_v49 = vmul.f32 0.088388346, %v61_v43 }
  0x36   :  { %1179 = vmatprep.subr.mxu1 %v1521_v0  ;;  %1145 = vmatpush3.msra.mxu0 %v83_v25  ;;  %v190_v50 = vmul.f32 0.088388346, %v174_v44  ;;  %v59_v51 = vld [vmem:[#allocation5 + $0x10] sm:$0xff]  ;;  %v76_v53 = vmul.f32 0.088388346, %v60_v47  ;;  %v58_v55 = vld [vmem:[#allocation5 + $0x8] sm:$0xff] }
  0x37   :  { %1180 = vmatpush3.msra.mxu1 %v196_v26  ;;  %1146 = vmatprep.subr.mxu0 %v1521_v0  ;;  %v172_v52 = vld [vmem:[#allocation5 + $0x90] sm:$0xff]  ;;  %v189_v54 = vmul.f32 0.088388346, %v173_v48  ;;  %v171_v56 = vld [vmem:[#allocation5 + $0x88] sm:$0xff]  ;;  %v75_v57 = vmul.f32 0.088388346, %v59_v51 }
  0x38   :  { %1181 = vmatprep.subr.mxu1 %v1521_v0  ;;  %1147 = vmatpush3.msra.mxu0 %v82_v29  ;;  %v188_v58 = vmul.f32 0.088388346, %v172_v52  ;;  %v57_v59 = vld [vmem:[#allocation5] sm:$0xff]  ;;  %v74_v61 = vmul.f32 0.088388346, %v58_v55  ;;  %v300_v2 = vld [vmem:[#allocation5 + $0x178] sm:$0xff] }
  0x39   :  { %1182 = vmatpush3.msra.mxu1 %v195_v30  ;;  %1148 = vmatprep.subr.mxu0 %v1521_v0  ;;  %v170_v60 = vld [vmem:[#allocation5 + $0x80] sm:$0xff]  ;;  %v187_v62 = vmul.f32 0.088388346, %v171_v56  ;;  %v73_v63 = vmul.f32 0.088388346, %v57_v59  ;;  %v415_v3 = vld [vmem:[#allocation5 + $0x1f8] sm:$0xff] }
  0x3a   :  { %1183 = vmatprep.subr.mxu1 %v1521_v0  ;;  %1149 = vmatpush3.msra.mxu0 %v81_v33  ;;  %v186_v1 = vmul.f32 0.088388346, %v170_v60  ;;  %v56_v4 = vld [vmem:[#allocation2] sm:$0x3]  ;;  %v168_v5 = vld [vmem:[#allocation2 + $0x2] sm:$0x3] }
  0x3b   :  { %1184 = vmatpush3.msra.mxu1 %v194_v34  ;;  %1150 = vmatprep.subr.mxu0 %v1521_v0  ;;  %v299_v6 = vld [vmem:[#allocation5 + $0x170] sm:$0xff]  ;;  %v316_v8 = vmul.f32 0.088388346, %v300_v2  ;;  %v431_v9 = vmul.f32 0.088388346, %v415_v3  ;;  %v298_v10 = vld [vmem:[#allocation5 + $0x168] sm:$0xff] }
  0x3c   :  { %1185 = vmatprep.subr.mxu1 %v1521_v0  ;;  %1151 = vmatpush3.msra.mxu0 %v80_v37  ;;  %v414_v7 = vld [vmem:[#allocation5 + $0x1f0] sm:$0xff]  ;;  %v413_v11 = vld [vmem:[#allocation5 + $0x1e8] sm:$0xff]  ;;  %v315_v12 = vmul.f32 0.088388346, %v299_v6  ;;  %v297_v14 = vld [vmem:[#allocation5 + $0x160] sm:$0xff]  ;;  %s1486_s5 = scalar_lea.vmem %s978_s2, 256 }
  0x3d   :  { %1186 = vmatpush3.msra.mxu1 %v193_v38  ;;  %1152 = vmatprep.subr.mxu0 %v1521_v0  ;;  %v430_v13 = vmul.f32 0.088388346, %v414_v7  ;;  %v412_v15 = vld [vmem:[#allocation5 + $0x1e0] sm:$0xff]  ;;  %v314_v16 = vmul.f32 0.088388346, %v298_v10  ;;  %v296_v18 = vld [vmem:[#allocation5 + $0x158] sm:$0xff]  ;;  %p1487_p1 = scmp.ne.s32.totalorder %s978_s2, %s1486_s5  ;;  %p1492_p3 = scmp.lt.s32.totalorder %s1486_s5, %s1486_s5 }
  0x3e   :  { %1187 = vmatprep.subr.mxu1 %v1521_v0  ;;  %1153 = vmatpush3.msra.mxu0 %v79_v41  ;;  %v429_v17 = vmul.f32 0.088388346, %v413_v11  ;;  %v411_v19 = vld [vmem:[#allocation5 + $0x1d8] sm:$0xff]  ;;  %v313_v20 = vmul.f32 0.088388346, %v297_v14  ;;  %v295_v22 = vld [vmem:[#allocation5 + $0x150] sm:$0xff] }
  0x3f   :  { %1188 = vmatpush3.msra.mxu1 %v192_v42  ;;  %1154 = vmatprep.subr.mxu0 %v1521_v0  ;;  %v428_v21 = vmul.f32 0.088388346, %v412_v15  ;;  %v410_v23 = vld [vmem:[#allocation5 + $0x1d0] sm:$0xff]  ;;  %v312_v24 = vmul.f32 0.088388346, %v296_v18  ;;  %v294_v26 = vld [vmem:[#allocation5 + $0x148] sm:$0xff]  ;;  %p1493_p4 = por %p1492_p3, %p1491_p2 }
  0x40   :  { %1189 = vmatprep.subr.mxu1 %v1521_v0  ;;  %1155 = vmatpush3.msra.mxu0 %v78_v45  ;;  %v427_v25 = vmul.f32 0.088388346, %v411_v19  ;;  %v409_v27 = vld [vmem:[#allocation5 + $0x1c8] sm:$0xff]  ;;  %v311_v28 = vmul.f32 0.088388346, %v295_v22  ;;  %v293_v30 = vld [vmem:[#allocation5 + $0x140] sm:$0xff] }
  0x41   :  { %1190 = vmatpush3.msra.mxu1 %v191_v46  ;;  %1156 = vmatprep.subr.mxu0 %v1521_v0  ;;  %v426_v29 = vmul.f32 0.088388346, %v410_v23  ;;  %v408_v31 = vld [vmem:[#allocation5 + $0x1c0] sm:$0xff]  ;;  %v310_v32 = vmul.f32 0.088388346, %v294_v26  ;;  %v292_v34 = vld [vmem:[#allocation5 + $0x138] sm:$0xff]  ;;  %p1494_p5 = pnand %p1493_p4, %p1487_p1 }
  0x42   :  { %1191 = vmatprep.subr.mxu1 %v1521_v0  ;;  %1157 = vmatpush3.msra.mxu0 %v77_v49  ;;  %v425_v33 = vmul.f32 0.088388346, %v409_v27  ;;  %v407_v35 = vld [vmem:[#allocation5 + $0x1b8] sm:$0xff]  ;;  %v309_v36 = vmul.f32 0.088388346, %v293_v30  ;;  %v291_v38 = vld [vmem:[#allocation5 + $0x130] sm:$0xff] }
  0x43   :  { %1192 = vmatpush3.msra.mxu1 %v190_v50  ;;  %1158 = vmatprep.subr.mxu0 %v1521_v0  ;;  %v424_v37 = vmul.f32 0.088388346, %v408_v31  ;;  %v406_v39 = vld [vmem:[#allocation5 + $0x1b0] sm:$0xff]  ;;  %v308_v40 = vmul.f32 0.088388346, %v292_v34  ;;  %v290_v42 = vld [vmem:[#allocation5 + $0x128] sm:$0xff] }
  0x44   :  { %1193 = vmatprep.subr.mxu1 %v1521_v0  ;;  %1159 = vmatpush3.msra.mxu0 %v76_v53  ;;  %v423_v41 = vmul.f32 0.088388346, %v407_v35  ;;  %v405_v43 = vld [vmem:[#allocation5 + $0x1a8] sm:$0xff]  ;;  %v307_v44 = vmul.f32 0.088388346, %v291_v38  ;;  %v289_v46 = vld [vmem:[#allocation5 + $0x120] sm:$0xff] }
  0x45   :  { %1194 = vmatpush3.msra.mxu1 %v189_v54  ;;  %1160 = vmatprep.subr.mxu0 %v1521_v0  ;;  %v422_v45 = vmul.f32 0.088388346, %v406_v39  ;;  %v404_v47 = vld [vmem:[#allocation5 + $0x1a0] sm:$0xff]  ;;  %v306_v48 = vmul.f32 0.088388346, %v290_v42  ;;  %v288_v50 = vld [vmem:[#allocation5 + $0x118] sm:$0xff] }
  0x46   :  { %1195 = vmatprep.subr.mxu1 %v1521_v0  ;;  %1161 = vmatpush3.msra.mxu0 %v75_v57  ;;  %v421_v49 = vmul.f32 0.088388346, %v405_v43  ;;  %v403_v51 = vld [vmem:[#allocation5 + $0x198] sm:$0xff]  ;;  %v305_v52 = vmul.f32 0.088388346, %v289_v46  ;;  %v287_v54 = vld [vmem:[#allocation5 + $0x110] sm:$0xff] }
  0x47   :  { %1196 = vmatpush3.msra.mxu1 %v188_v58  ;;  %1162 = vmatprep.subr.mxu0 %v1521_v0  ;;  %v420_v53 = vmul.f32 0.088388346, %v404_v47  ;;  %v402_v55 = vld [vmem:[#allocation5 + $0x190] sm:$0xff]  ;;  %v304_v56 = vmul.f32 0.088388346, %v288_v50  ;;  %v286_v58 = vld [vmem:[#allocation5 + $0x108] sm:$0xff] }
  0x48   :  { %1197 = vmatprep.subr.mxu1 %v1521_v0  ;;  %1163 = vmatpush3.msra.mxu0 %v74_v61  ;;  %v419_v57 = vmul.f32 0.088388346, %v403_v51  ;;  %v401_v59 = vld [vmem:[#allocation5 + $0x188] sm:$0xff]  ;;  %v303_v60 = vmul.f32 0.088388346, %v287_v54  ;;  %v400_v2 = vld [vmem:[#allocation5 + $0x180] sm:$0xff] }
  0x49   :  { %1198 = vmatpush3.msra.mxu1 %v187_v62  ;;  %1164 = vmatprep.subr.mxu0 %v1521_v0  ;;  %v418_v61 = vmul.f32 0.088388346, %v402_v55  ;;  %v285_v62 = vld [vmem:[#allocation5 + $0x100] sm:$0xff]  ;;  %v645_v6 = vld [vmem:[#allocation5 + $0x2f8] sm:$0xff]  ;;  %v283_v7 = vld [vmem:[#allocation2 + $0x4] sm:$0x3] }
  0x4a   :  { %1199 = vmatprep.subr.mxu1 %v1521_v0  ;;  %1165 = vmatpush3.msra.mxu0 %v73_v63  ;;  %v302_v63 = vmul.f32 0.088388346, %v286_v58  ;;  %v301_v3 = vmul.f32 0.088388346, %v285_v62  ;;  %v644_v10 = vld [vmem:[#allocation5 + $0x2f0] sm:$0xff]  ;;  %v643_v14 = vld [vmem:[#allocation5 + $0x2e8] sm:$0xff] }
  0x4b   :  { %1200 = vmatpush3.msra.mxu1 %v186_v1  ;;  %1167 = vmatmul.mubr.f32.vlgmr.msra.gmra.mxu0 %v56_v4  ;;  %v417_v1 = vmul.f32 0.088388346, %v401_v59  ;;  %v416_v4 = vmul.f32 0.088388346, %v400_v2  ;;  %v642_v18 = vld [vmem:[#allocation5 + $0x2e0] sm:$0xff]  ;;  %v641_v22 = vld [vmem:[#allocation5 + $0x2d8] sm:$0xff] }
  0x4c   :  { %1202 = vmatmul.mubr.f32.vlgmr.msra.gmra.mxu1 %v168_v5  ;;  %1204 = vmatprep.subr.mxu0 %v1521_v0  ;;  %v530_v5 = vld [vmem:[#allocation5 + $0x278] sm:$0xff]  ;;  %v640_v26 = vld [vmem:[#allocation5 + $0x2d0] sm:$0xff]  ;;  %v639_v30 = vld [vmem:[#allocation5 + $0x2c8] sm:$0xff] }
  0x4d   :  { %1239 = vmatprep.subr.mxu1 %v1521_v0  ;;  %1205 = vmatpush3.msra.mxu0 %v316_v8  ;;  %v398_v8 = vld [vmem:[#allocation2 + $0x6] sm:$0x3]  ;;  %v546_v11 = vmul.f32 0.088388346, %v530_v5  ;;  %v638_v34 = vld [vmem:[#allocation5 + $0x2c0] sm:$0xff]  ;;  %v637_v38 = vld [vmem:[#allocation5 + $0x2b8] sm:$0xff] }
  0x4e   :  { %1240 = vmatpush3.msra.mxu1 %v431_v9  ;;  %1206 = vmatprep.subr.mxu0 %v1521_v0  ;;  %v529_v9 = vld [vmem:[#allocation5 + $0x270] sm:$0xff]  ;;  %v635_v46 = vld [vmem:[#allocation5 + $0x2a8] sm:$0xff]  ;;  %v634_v50 = vld [vmem:[#allocation5 + $0x2a0] sm:$0xff] }
  0x4f   :  { %1241 = vmatprep.subr.mxu1 %v1521_v0  ;;  %1207 = vmatpush3.msra.mxu0 %v315_v12  ;;  %v661_v12 = vmul.f32 0.088388346, %v645_v6  ;;  %v545_v15 = vmul.f32 0.088388346, %v529_v9  ;;  %v636_v42 = vld [vmem:[#allocation5 + $0x2b0] sm:$0xff]  ;;  %v633_v54 = vld [vmem:[#allocation5 + $0x298] sm:$0xff] }
  0x50   :  { %1242 = vmatpush3.msra.mxu1 %v430_v13  ;;  %1208 = vmatprep.subr.mxu0 %v1521_v0  ;;  %v528_v13 = vld [vmem:[#allocation5 + $0x268] sm:$0xff]  ;;  %v632_v58 = vld [vmem:[#allocation5 + $0x290] sm:$0xff]  ;;  %v515_v2 = vld [vmem:[#allocation5 + $0x200] sm:$0xff] }
  0x51   :  { %1243 = vmatprep.subr.mxu1 %v1521_v0  ;;  %1209 = vmatpush3.msra.mxu0 %v314_v16  ;;  %v660_v16 = vmul.f32 0.088388346, %v644_v10  ;;  %v544_v19 = vmul.f32 0.088388346, %v528_v13  ;;  %v631_v62 = vld [vmem:[#allocation5 + $0x288] sm:$0xff]  ;;  %v630_v5 = vld [vmem:[#allocation5 + $0x280] sm:$0xff] }
  0x52   :  { %1244 = vmatpush3.msra.mxu1 %v429_v17  ;;  %1210 = vmatprep.subr.mxu0 %v1521_v0  ;;  %v527_v17 = vld [vmem:[#allocation5 + $0x260] sm:$0xff]  ;;  %v531_v6 = vmul.f32 0.088388346, %v515_v2  ;;  %v875_v9 = vld [vmem:[#allocation5 + $0x3f8] sm:$0xff]  ;;  %v874_v13 = vld [vmem:[#allocation5 + $0x3f0] sm:$0xff] }
  0x53   :  { %1245 = vmatprep.subr.mxu1 %v1521_v0  ;;  %1211 = vmatpush3.msra.mxu0 %v313_v20  ;;  %v659_v20 = vmul.f32 0.088388346, %v643_v14  ;;  %v543_v23 = vmul.f32 0.088388346, %v527_v17  ;;  %v513_v10 = vld [vmem:[#allocation2 + $0x8] sm:$0x3] }
  0x54   :  { %1246 = vmatpush3.msra.mxu1 %v428_v21  ;;  %1212 = vmatprep.subr.mxu0 %v1521_v0  ;;  %v526_v21 = vld [vmem:[#allocation5 + $0x258] sm:$0xff]  ;;  %v873_v17 = vld [vmem:[#allocation5 + $0x3e8] sm:$0xff] }
  0x55   :  { %1247 = vmatprep.subr.mxu1 %v1521_v0  ;;  %1213 = vmatpush3.msra.mxu0 %v312_v24  ;;  %v658_v24 = vmul.f32 0.088388346, %v642_v18  ;;  %v542_v27 = vmul.f32 0.088388346, %v526_v21  ;;  %v872_v21 = vld [vmem:[#allocation5 + $0x3e0] sm:$0xff]  ;;  %v861_v2 = vld [vmem:[#allocation5 + $0x388] sm:$0xff] }
  0x56   :  { %1248 = vmatpush3.msra.mxu1 %v427_v25  ;;  %1214 = vmatprep.subr.mxu0 %v1521_v0  ;;  %v525_v25 = vld [vmem:[#allocation5 + $0x250] sm:$0xff] }
  0x57   :  { %1249 = vmatprep.subr.mxu1 %v1521_v0  ;;  %1215 = vmatpush3.msra.mxu0 %v311_v28  ;;  %v657_v28 = vmul.f32 0.088388346, %v641_v22  ;;  %v541_v31 = vmul.f32 0.088388346, %v525_v25  ;;  %v871_v25 = vld [vmem:[#allocation5 + $0x3d8] sm:$0xff] }
  0x58   :  { %1250 = vmatpush3.msra.mxu1 %v426_v29  ;;  %1216 = vmatprep.subr.mxu0 %v1521_v0  ;;  %v524_v29 = vld [vmem:[#allocation5 + $0x248] sm:$0xff] }
  0x59   :  { %1251 = vmatprep.subr.mxu1 %v1521_v0  ;;  %1217 = vmatpush3.msra.mxu0 %v310_v32  ;;  %v656_v32 = vmul.f32 0.088388346, %v640_v26  ;;  %v540_v35 = vmul.f32 0.088388346, %v524_v29  ;;  %v870_v29 = vld [vmem:[#allocation5 + $0x3d0] sm:$0xff] }
  0x5a   :  { %1252 = vmatpush3.msra.mxu1 %v425_v33  ;;  %1218 = vmatprep.subr.mxu0 %v1521_v0  ;;  %v523_v33 = vld [vmem:[#allocation5 + $0x240] sm:$0xff] }
  0x5b   :  { %1253 = vmatprep.subr.mxu1 %v1521_v0  ;;  %1219 = vmatpush3.msra.mxu0 %v309_v36  ;;  %v655_v36 = vmul.f32 0.088388346, %v639_v30  ;;  %v539_v39 = vmul.f32 0.088388346, %v523_v33  ;;  %v869_v33 = vld [vmem:[#allocation5 + $0x3c8] sm:$0xff] }
  0x5c   :  { %1254 = vmatpush3.msra.mxu1 %v424_v37  ;;  %1220 = vmatprep.subr.mxu0 %v1521_v0  ;;  %v522_v37 = vld [vmem:[#allocation5 + $0x238] sm:$0xff] }
  0x5d   :  { %1255 = vmatprep.subr.mxu1 %v1521_v0  ;;  %1221 = vmatpush3.msra.mxu0 %v308_v40  ;;  %v654_v40 = vmul.f32 0.088388346, %v638_v34  ;;  %v538_v43 = vmul.f32 0.088388346, %v522_v37  ;;  %v868_v37 = vld [vmem:[#allocation5 + $0x3c0] sm:$0xff] }
  0x5e   :  { %1256 = vmatpush3.msra.mxu1 %v423_v41  ;;  %1222 = vmatprep.subr.mxu0 %v1521_v0  ;;  %v521_v41 = vld [vmem:[#allocation5 + $0x230] sm:$0xff] }
  0x5f   :  { %1257 = vmatprep.subr.mxu1 %v1521_v0  ;;  %1223 = vmatpush3.msra.mxu0 %v307_v44  ;;  %v653_v44 = vmul.f32 0.088388346, %v637_v38  ;;  %v537_v47 = vmul.f32 0.088388346, %v521_v41  ;;  %v867_v41 = vld [vmem:[#allocation5 + $0x3b8] sm:$0xff] }
  0x60   :  { %1258 = vmatpush3.msra.mxu1 %v422_v45  ;;  %1224 = vmatprep.subr.mxu0 %v1521_v0  ;;  %v520_v45 = vld [vmem:[#allocation5 + $0x228] sm:$0xff] }
  0x61   :  { %1259 = vmatprep.subr.mxu1 %v1521_v0  ;;  %1225 = vmatpush3.msra.mxu0 %v306_v48  ;;  %v652_v48 = vmul.f32 0.088388346, %v636_v42  ;;  %v536_v51 = vmul.f32 0.088388346, %v520_v45  ;;  %v866_v45 = vld [vmem:[#allocation5 + $0x3b0] sm:$0xff] }
  0x62   :  { %1260 = vmatpush3.msra.mxu1 %v421_v49  ;;  %1226 = vmatprep.subr.mxu0 %v1521_v0  ;;  %v519_v49 = vld [vmem:[#allocation5 + $0x220] sm:$0xff] }
  0x63   :  { %1261 = vmatprep.subr.mxu1 %v1521_v0  ;;  %1227 = vmatpush3.msra.mxu0 %v305_v52  ;;  %v651_v52 = vmul.f32 0.088388346, %v635_v46  ;;  %v535_v55 = vmul.f32 0.088388346, %v519_v49  ;;  %v865_v49 = vld [vmem:[#allocation5 + $0x3a8] sm:$0xff] }
  0x64   :  { %1262 = vmatpush3.msra.mxu1 %v420_v53  ;;  %1228 = vmatprep.subr.mxu0 %v1521_v0  ;;  %v518_v53 = vld [vmem:[#allocation5 + $0x218] sm:$0xff] }
  0x65   :  { %1263 = vmatprep.subr.mxu1 %v1521_v0  ;;  %1229 = vmatpush3.msra.mxu0 %v304_v56  ;;  %v650_v56 = vmul.f32 0.088388346, %v634_v50  ;;  %v534_v59 = vmul.f32 0.088388346, %v518_v53  ;;  %v864_v53 = vld [vmem:[#allocation5 + $0x3a0] sm:$0xff] }
  0x66   :  { %1264 = vmatpush3.msra.mxu1 %v419_v57  ;;  %1230 = vmatprep.subr.mxu0 %v1521_v0  ;;  %v517_v57 = vld [vmem:[#allocation5 + $0x210] sm:$0xff] }
  0x67   :  { %1265 = vmatprep.subr.mxu1 %v1521_v0  ;;  %1231 = vmatpush3.msra.mxu0 %v303_v60  ;;  %v649_v60 = vmul.f32 0.088388346, %v633_v54 }
  0x68   :  { %1266 = vmatpush3.msra.mxu1 %v418_v61  ;;  %1232 = vmatprep.subr.mxu0 %v1521_v0  ;;  %v516_v61 = vld [vmem:[#allocation5 + $0x208] sm:$0xff] }
  0x69   :  { %1267 = vmatprep.subr.mxu1 %v1521_v0  ;;  %1233 = vmatpush3.msra.mxu0 %v302_v63  ;;  %v533_v63 = vmul.f32 0.088388346, %v517_v57  ;;  %v863_v57 = vld [vmem:[#allocation5 + $0x398] sm:$0xff] }
  0x6a   :  { %1268 = vmatpush3.msra.mxu1 %v417_v1  ;;  %1234 = vmatprep.subr.mxu0 %v1521_v0  ;;  %v648_v1 = vmul.f32 0.088388346, %v632_v58 }
  0x6b   :  { %1269 = vmatprep.subr.mxu1 %v1521_v0  ;;  %1235 = vmatpush3.msra.mxu0 %v301_v3  ;;  %v532_v3 = vmul.f32 0.088388346, %v516_v61  ;;  %v862_v61 = vld [vmem:[#allocation5 + $0x390] sm:$0xff] }
  0x6c   :  { %1236 = vmatprep.mubr.msk.f32.mxu0 %vm1522_vm0, %v1521_v0  ;;  %1270 = vmatpush3.msra.mxu1 %v416_v4  ;;  %v647_v4 = vmul.f32 0.088388346, %v631_v62 }
  0x6d   :  { %1271 = vmatprep.mubr.msk.f32.mxu1 %vm1522_vm0, %v1521_v0  ;;  %1237 = vmatmul.mubr.f32.vlgmr.msra.gmra.mxu0 %v283_v7  ;;  %v646_v7 = vmul.f32 0.088388346, %v630_v5  ;;  %v745_v5 = vld [vmem:[#allocation5 + $0x300] sm:$0xff] }
  0x6e   :  { %1272 = vmatmul.mubr.f32.vlgmr.msra.gmra.mxu1 %v398_v8  ;;  %1274 = vmatprep.subr.mxu0 %v1521_v0  ;;  %v760_v8 = vld [vmem:[#allocation5 + $0x378] sm:$0xff] }
  0x6f   :  { %1309 = vmatprep.subr.mxu1 %v1521_v0  ;;  %1275 = vmatpush3.msra.mxu0 %v546_v11  ;;  %v628_v11 = vld [vmem:[#allocation2 + $0xa] sm:$0x3]  ;;  %v776_v14 = vmul.f32 0.088388346, %v760_v8  ;;  %v860_v8 = vld [vmem:[#allocation5 + $0x380] sm:$0xff] }
  0x70   :  { %1310 = vmatpush3.msra.mxu1 %v661_v12  ;;  %1276 = vmatprep.subr.mxu0 %v1521_v0  ;;  %v759_v12 = vld [vmem:[#allocation5 + $0x370] sm:$0xff] }
  0x71   :  { %1311 = vmatprep.subr.mxu1 %v1521_v0  ;;  %1277 = vmatpush3.msra.mxu0 %v545_v15  ;;  %v891_v15 = vmul.f32 0.088388346, %v875_v9  ;;  %v775_v18 = vmul.f32 0.088388346, %v759_v12  ;;  %v761_v9 = vmul.f32 0.088388346, %v745_v5 }
  0x72   :  { %1312 = vmatpush3.msra.mxu1 %v660_v16  ;;  %1278 = vmatprep.subr.mxu0 %v1521_v0  ;;  %v758_v16 = vld [vmem:[#allocation5 + $0x368] sm:$0xff]  ;;  %v858_v12 = vld [vmem:[#allocation2 + $0xe] sm:$0x3] }
  0x73   :  { %1313 = vmatprep.subr.mxu1 %v1521_v0  ;;  %1279 = vmatpush3.msra.mxu0 %v544_v19  ;;  %v890_v19 = vmul.f32 0.088388346, %v874_v13  ;;  %v774_v22 = vmul.f32 0.088388346, %v758_v16  ;;  %v990_v13 = vld [vmem:[#allocation7] ss:$0 sm:$0xff] }
  0x74   :  { %1314 = vmatpush3.msra.mxu1 %v659_v20  ;;  %1280 = vmatprep.subr.mxu0 %v1521_v0  ;;  %v757_v20 = vld [vmem:[#allocation5 + $0x360] sm:$0xff] }
  0x75   :  { %1315 = vmatprep.subr.mxu1 %v1521_v0  ;;  %1281 = vmatpush3.msra.mxu0 %v543_v23  ;;  %v889_v23 = vmul.f32 0.088388346, %v873_v17  ;;  %v773_v26 = vmul.f32 0.088388346, %v757_v20 }
  0x76   :  { %1316 = vmatpush3.msra.mxu1 %v658_v24  ;;  %1282 = vmatprep.subr.mxu0 %v1521_v0  ;;  %v756_v24 = vld [vmem:[#allocation5 + $0x358] sm:$0xff] }
  0x77   :  { %1317 = vmatprep.subr.mxu1 %v1521_v0  ;;  %1283 = vmatpush3.msra.mxu0 %v542_v27  ;;  %v888_v27 = vmul.f32 0.088388346, %v872_v21  ;;  %v772_v30 = vmul.f32 0.088388346, %v756_v24  ;;  %v992_v21 = vld [vmem:[#allocation7 + $0x2] ss:$0 sm:$0xff] }
  0x78   :  { %1318 = vmatpush3.msra.mxu1 %v657_v28  ;;  %1284 = vmatprep.subr.mxu0 %v1521_v0  ;;  %v755_v28 = vld [vmem:[#allocation5 + $0x350] sm:$0xff] }
  0x79   :  { %1319 = vmatprep.subr.mxu1 %v1521_v0  ;;  %1285 = vmatpush3.msra.mxu0 %v541_v31  ;;  %v887_v31 = vmul.f32 0.088388346, %v871_v25  ;;  %v771_v34 = vmul.f32 0.088388346, %v755_v28  ;;  %v994_v28 = vld [vmem:[#allocation7 + $0x4] ss:$0 sm:$0xff] }
  0x7a   :  { %1320 = vmatpush3.msra.mxu1 %v656_v32  ;;  %1286 = vmatprep.subr.mxu0 %v1521_v0  ;;  %v754_v32 = vld [vmem:[#allocation5 + $0x348] sm:$0xff] }
  0x7b   :  { %1321 = vmatprep.subr.mxu1 %v1521_v0  ;;  %1287 = vmatpush3.msra.mxu0 %v540_v35  ;;  %v886_v35 = vmul.f32 0.088388346, %v870_v29  ;;  %v770_v38 = vmul.f32 0.088388346, %v754_v32  ;;  %v995_v29 = vld [vmem:[#allocation7 + $0x5] ss:$0 sm:$0xff] }
  0x7c   :  { %1322 = vmatpush3.msra.mxu1 %v655_v36  ;;  %1288 = vmatprep.subr.mxu0 %v1521_v0  ;;  %v753_v36 = vld [vmem:[#allocation5 + $0x340] sm:$0xff] }
  0x7d   :  { %1323 = vmatprep.subr.mxu1 %v1521_v0  ;;  %1289 = vmatpush3.msra.mxu0 %v539_v39  ;;  %v885_v39 = vmul.f32 0.088388346, %v869_v33  ;;  %v769_v42 = vmul.f32 0.088388346, %v753_v36  ;;  %v996_v36 = vld [vmem:[#allocation7 + $0x6] ss:$0 sm:$0xff] }
  0x7e   :  { %1324 = vmatpush3.msra.mxu1 %v654_v40  ;;  %1290 = vmatprep.subr.mxu0 %v1521_v0  ;;  %v752_v40 = vld [vmem:[#allocation5 + $0x338] sm:$0xff] }
  0x7f   :  { %1325 = vmatprep.subr.mxu1 %v1521_v0  ;;  %1291 = vmatpush3.msra.mxu0 %v538_v43  ;;  %v884_v43 = vmul.f32 0.088388346, %v868_v37  ;;  %v768_v46 = vmul.f32 0.088388346, %v752_v40  ;;  %v997_v37 = vld [vmem:[#allocation7 + $0x7] ss:$0 sm:$0xff] }
  0x80   :  { %1326 = vmatpush3.msra.mxu1 %v653_v44  ;;  %1292 = vmatprep.subr.mxu0 %v1521_v0  ;;  %v751_v44 = vld [vmem:[#allocation5 + $0x330] sm:$0xff] }
  0x81   :  { %1327 = vmatprep.subr.mxu1 %v1521_v0  ;;  %1293 = vmatpush3.msra.mxu0 %v537_v47  ;;  %v883_v47 = vmul.f32 0.088388346, %v867_v41  ;;  %v767_v50 = vmul.f32 0.088388346, %v751_v44 }
  0x82   :  { %1328 = vmatpush3.msra.mxu1 %v652_v48  ;;  %1294 = vmatprep.subr.mxu0 %v1521_v0  ;;  %v750_v48 = vld [vmem:[#allocation5 + $0x328] sm:$0xff] }
  0x83   :  { %1329 = vmatprep.subr.mxu1 %v1521_v0  ;;  %1295 = vmatpush3.msra.mxu0 %v536_v51  ;;  %v882_v51 = vmul.f32 0.088388346, %v866_v45  ;;  %v766_v54 = vmul.f32 0.088388346, %v750_v48 }
  0x84   :  { %1330 = vmatpush3.msra.mxu1 %v651_v52  ;;  %1296 = vmatprep.subr.mxu0 %v1521_v0  ;;  %v749_v52 = vld [vmem:[#allocation5 + $0x320] sm:$0xff] }
  0x85   :  { %1331 = vmatprep.subr.mxu1 %v1521_v0  ;;  %1297 = vmatpush3.msra.mxu0 %v535_v55  ;;  %v881_v55 = vmul.f32 0.088388346, %v865_v49  ;;  %v765_v58 = vmul.f32 0.088388346, %v749_v52 }
  0x86   :  { %1332 = vmatpush3.msra.mxu1 %v650_v56  ;;  %1298 = vmatprep.subr.mxu0 %v1521_v0  ;;  %v748_v56 = vld [vmem:[#allocation5 + $0x318] sm:$0xff] }
  0x87   :  { %1333 = vmatprep.subr.mxu1 %v1521_v0  ;;  %1299 = vmatpush3.msra.mxu0 %v534_v59  ;;  %v880_v59 = vmul.f32 0.088388346, %v864_v53  ;;  %v764_v62 = vmul.f32 0.088388346, %v748_v56 }
  0x88   :  { %1334 = vmatpush3.msra.mxu1 %v649_v60  ;;  %1300 = vmatprep.subr.mxu0 %v1521_v0  ;;  %v747_v60 = vld [vmem:[#allocation5 + $0x310] sm:$0xff] }
  0x89   :  { %1335 = vmatprep.subr.mxu1 %v1521_v0  ;;  %1301 = vmatpush3.msra.mxu0 %v533_v63  ;;  %v879_v63 = vmul.f32 0.088388346, %v863_v57 }
  0x8a   :  { %1336 = vmatpush3.msra.mxu1 %v648_v1  ;;  %1302 = vmatprep.subr.mxu0 %v1521_v0  ;;  %v746_v1 = vld [vmem:[#allocation5 + $0x308] sm:$0xff] }
  0x8b   :  { %1337 = vmatprep.subr.mxu1 %v1521_v0  ;;  %1303 = vmatpush3.msra.mxu0 %v532_v3  ;;  %v763_v3 = vmul.f32 0.088388346, %v747_v60 }
  0x8c   :  { %1338 = vmatpush3.msra.mxu1 %v647_v4  ;;  %1304 = vmatprep.subr.mxu0 %v1521_v0  ;;  %v878_v4 = vmul.f32 0.088388346, %v862_v61 }
  0x8d   :  { %1339 = vmatprep.subr.mxu1 %v1521_v0  ;;  %1305 = vmatpush3.msra.mxu0 %v531_v6  ;;  %v762_v6 = vmul.f32 0.088388346, %v746_v1 }
  0x8e   :  { %1306 = vmatprep.mubr.msk.f32.mxu0 %vm1522_vm0, %v1521_v0  ;;  %1340 = vmatpush3.msra.mxu1 %v646_v7  ;;  %v877_v7 = vmul.f32 0.088388346, %v861_v2 }
  0x8f   :  { %1341 = vmatprep.mubr.msk.f32.mxu1 %vm1522_vm0, %v1521_v0  ;;  %1307 = vmatmul.mubr.f32.vlgmr.msra.gmra.mxu0 %v513_v10  ;;  %v876_v10 = vmul.f32 0.088388346, %v860_v8 }
  0x90   :  { %1342 = vmatmul.mubr.f32.vlgmr.msra.gmra.mxu1 %v628_v11  ;;  %1344 = vmatprep.subr.mxu0 %v1521_v0  ;;  %v743_v11 = vld [vmem:[#allocation2 + $0xc] sm:$0x3] }
  0x91   :  { %1379 = vmatprep.subr.mxu1 %v1521_v0  ;;  %1345 = vmatpush3.msra.mxu0 %v776_v14  ;;  %v991_v14 = vld [vmem:[#allocation7 + $0x1] ss:$0 sm:$0xff] }
  0x92   :  { %1380 = vmatpush3.msra.mxu1 %v891_v15  ;;  %1346 = vmatprep.subr.mxu0 %v1521_v0 }
  0x93   :  { %1381 = vmatprep.subr.mxu1 %v1521_v0  ;;  %1347 = vmatpush3.msra.mxu0 %v775_v18 }
  0x94   :  { %1382 = vmatpush3.msra.mxu1 %v890_v19  ;;  %1348 = vmatprep.subr.mxu0 %v1521_v0 }
  0x95   :  { %1383 = vmatprep.subr.mxu1 %v1521_v0  ;;  %1349 = vmatpush3.msra.mxu0 %v774_v22  ;;  %v993_v22 = vld [vmem:[#allocation7 + $0x3] ss:$0 sm:$0xff] }
  0x96   :  { %1384 = vmatpush3.msra.mxu1 %v889_v23  ;;  %1350 = vmatprep.subr.mxu0 %v1521_v0 }
  0x97   :  { %1385 = vmatprep.subr.mxu1 %v1521_v0  ;;  %1351 = vmatpush3.msra.mxu0 %v773_v26 }
  0x98   :  { %1386 = vmatpush3.msra.mxu1 %v888_v27  ;;  %1352 = vmatprep.subr.mxu0 %v1521_v0 }
  0x99   :  { %1387 = vmatprep.subr.mxu1 %v1521_v0  ;;  %1353 = vmatpush3.msra.mxu0 %v772_v30 }
  0x9a   :  { %1388 = vmatpush3.msra.mxu1 %v887_v31  ;;  %1354 = vmatprep.subr.mxu0 %v1521_v0 }
  0x9b   :  { %1389 = vmatprep.subr.mxu1 %v1521_v0  ;;  %1355 = vmatpush3.msra.mxu0 %v771_v34 }
  0x9c   :  { %1390 = vmatpush3.msra.mxu1 %v886_v35  ;;  %1356 = vmatprep.subr.mxu0 %v1521_v0 }
  0x9d   :  { %1391 = vmatprep.subr.mxu1 %v1521_v0  ;;  %1357 = vmatpush3.msra.mxu0 %v770_v38 }
  0x9e   :  { %1392 = vmatpush3.msra.mxu1 %v885_v39  ;;  %1358 = vmatprep.subr.mxu0 %v1521_v0 }
  0x9f   :  { %1393 = vmatprep.subr.mxu1 %v1521_v0  ;;  %1359 = vmatpush3.msra.mxu0 %v769_v42 }
  0xa0   :  { %1394 = vmatpush3.msra.mxu1 %v884_v43  ;;  %1360 = vmatprep.subr.mxu0 %v1521_v0 }
  0xa1   :  { %1395 = vmatprep.subr.mxu1 %v1521_v0  ;;  %1361 = vmatpush3.msra.mxu0 %v768_v46 }
  0xa2   :  { %1396 = vmatpush3.msra.mxu1 %v883_v47  ;;  %1362 = vmatprep.subr.mxu0 %v1521_v0 }
  0xa3   :  { %1397 = vmatprep.subr.mxu1 %v1521_v0  ;;  %1363 = vmatpush3.msra.mxu0 %v767_v50 }
  0xa4   :  { %1398 = vmatpush3.msra.mxu1 %v882_v51  ;;  %1364 = vmatprep.subr.mxu0 %v1521_v0 }
  0xa5   :  { %1399 = vmatprep.subr.mxu1 %v1521_v0  ;;  %1365 = vmatpush3.msra.mxu0 %v766_v54 }
  0xa6   :  { %1400 = vmatpush3.msra.mxu1 %v881_v55  ;;  %1366 = vmatprep.subr.mxu0 %v1521_v0 }
  0xa7   :  { %1401 = vmatprep.subr.mxu1 %v1521_v0  ;;  %1367 = vmatpush3.msra.mxu0 %v765_v58 }
  0xa8   :  { %1402 = vmatpush3.msra.mxu1 %v880_v59  ;;  %1368 = vmatprep.subr.mxu0 %v1521_v0 }
  0xa9   :  { %1403 = vmatprep.subr.mxu1 %v1521_v0  ;;  %1369 = vmatpush3.msra.mxu0 %v764_v62 }
  0xaa   :  { %1404 = vmatpush3.msra.mxu1 %v879_v63  ;;  %1370 = vmatprep.subr.mxu0 %v1521_v0 }
  0xab   :  { %1405 = vmatprep.subr.mxu1 %v1521_v0  ;;  %1371 = vmatpush3.msra.mxu0 %v763_v3 }
  0xac   :  { %1406 = vmatpush3.msra.mxu1 %v878_v4  ;;  %1372 = vmatprep.subr.mxu0 %v1521_v0 }
  0xad   :  { %1407 = vmatprep.subr.mxu1 %v1521_v0  ;;  %1373 = vmatpush3.msra.mxu0 %v762_v6 }
  0xae   :  { %1408 = vmatpush3.msra.mxu1 %v877_v7  ;;  %1374 = vmatprep.subr.mxu0 %v1521_v0 }
  0xaf   :  { %1409 = vmatprep.subr.mxu1 %v1521_v0  ;;  %1375 = vmatpush3.msra.mxu0 %v761_v9 }
  0xb0   :  { %1376 = vmatprep.mubr.msk.f32.mxu0 %vm1522_vm0, %v1521_v0  ;;  %1410 = vmatpush3.msra.mxu1 %v876_v10 }
  0xb1   :  { %1411 = vmatprep.mubr.msk.f32.mxu1 %vm1522_vm0, %v1521_v0  ;;  %1377 = vmatmul.mubr.f32.vlgmr.msra.gmra.mxu0 %v743_v11 }
  0xb2   :  { %1412 = vmatmul.mubr.f32.vlgmr.msra.gmra.mxu1 %v858_v12 }
 0x10b   :  { %v162_v15 = vpop.f32.mrf.mxu0 }
 0x10c   :  { %v276_v16 = vpop.f32.mrf.mxu1  ;;  %v163_v17 = vadd.f32 %v990_v13, %v162_v15 }
 0x10d   :  { %v277_v18 = vadd.f32 %v991_v14, %v276_v16  ;;  %v1168_v19 = vpop.f32.mrf.mxu0 }
 0x10e   :  { %v1203_v20 = vpop.f32.mrf.mxu1  ;;  %166 = vst [vmem:[#allocation8] sm:$0x3] %v163_v17 }
 0x10f   :  { %281 = vst [vmem:[#allocation8 + $0x2] sm:$0x3] %v277_v18 }
 0x12d   :  { %v391_v23 = vpop.f32.mrf.mxu0 }
 0x12e   :  { %v506_v24 = vpop.f32.mrf.mxu1  ;;  %v392_v25 = vadd.f32 %v992_v21, %v391_v23 }
 0x12f   :  { %v507_v26 = vadd.f32 %v993_v22, %v506_v24  ;;  %v1238_v27 = vpop.f32.mrf.mxu0 }
 0x130   :  { %v1273_v0 = vpop.f32.mrf.mxu1  ;;  %396 = vst [vmem:[#allocation8 + $0x4] sm:$0x3] %v392_v25 }
 0x131   :  { %511 = vst [vmem:[#allocation8 + $0x6] sm:$0x3] %v507_v26 }
 0x14f   :  { %v621_v30 = vpop.f32.mrf.mxu0 }
 0x150   :  { %v736_v31 = vpop.f32.mrf.mxu1  ;;  %v622_v32 = vadd.f32 %v994_v28, %v621_v30 }
 0x151   :  { %v737_v33 = vadd.f32 %v995_v29, %v736_v31  ;;  %v1308_v34 = vpop.f32.mrf.mxu0 }
 0x152   :  { %v1343_v35 = vpop.f32.mrf.mxu1  ;;  %626 = vst [vmem:[#allocation8 + $0x8] sm:$0x3] %v622_v32 }
 0x153   :  { %741 = vst [vmem:[#allocation8 + $0xa] sm:$0x3] %v737_v33 }
 0x171   :  { %v851_v38 = vpop.f32.mrf.mxu0 }
 0x172   :  { %v966_v39 = vpop.f32.mrf.mxu1  ;;  %v852_v40 = vadd.f32 %v996_v36, %v851_v38 }
 0x173   :  { %v967_v41 = vadd.f32 %v997_v37, %v966_v39  ;;  %v1378_v42 = vpop.f32.mrf.mxu0 }
 0x174   :  { %v1413_v43 = vpop.f32.mrf.mxu1  ;;  %856 = vst [vmem:[#allocation8 + $0xc] sm:$0x3] %v852_v40 }
 0x175   :  { %971 = vst [vmem:[#allocation8 + $0xe] sm:$0x3] %v967_v41 }
 0x176   :  { %1497 = shalt.err (!%p1494_p5)
}
 0x177   :  { %983 = dma.vmem_to_hbm [thread:$0]  %s978_s2, 256, %s1709_s3, [#allocation4], %s1516_s22, %s1516_s22, %s1517_s23  }
 0x178   :  { %1510 = dma.done.wait [#allocation4], 256  }
 0x179   :  { %1511 = vsyncadd [#allocation4], 4294967040 }
 0x17a   :  { %987 = vsyncpa [#allocation3], 1 }
 0x17b   :  { %988 = vsyncpa [#allocation6], 1 }
 0x17c   :  { %989 = vsyncpa [#allocation4], 1 }

</bundles_post_ra>
